<compile_context>
chip_gen: v6e
topology: v6e:2x2x1
jax: 0.10.0
libtpu: 0.0.40
codegen_flags: <defaults>
</compile_context>

<pallas_src>
import functools

import jax
import jax.numpy as jnp
from jax.experimental import pallas as pl
from jax.experimental.pallas import tpu as pltpu


def mlp_kernel(x_ref, w1_ref, b1_ref, w2_ref, b2_ref, w3_ref, b3_ref,
               w4r_ref, b4_ref, o_ref):
    """Whole 4-layer MLP for one batch tile, fused in VMEM."""
    dt = x_ref.dtype  # native compute dtype (f32 or bf16); accumulate in f32

    x = x_ref[...]  # (bt, in_dim) -- no upcast; MXU is bf16-in / f32-acc native
    h = jnp.dot(x, w1_ref[...], preferred_element_type=jnp.float32)
    h = jnp.maximum(h + b1_ref[...], 0.0).astype(dt)

    h = jnp.dot(h, w2_ref[...], preferred_element_type=jnp.float32)
    h = jnp.maximum(h + b2_ref[...], 0.0).astype(dt)

    h = jnp.dot(h, w3_ref[...], preferred_element_type=jnp.float32)
    h = jnp.maximum(h + b3_ref[...], 0.0).astype(dt)

    # fc4 as a transposed contraction: (1, half) x (bt, half) contracting the
    # feature axis -> (1, bt).  Batch lands on the lane axis, so the output
    # store is lane-dense (unmasked vst) instead of a width-1 masked column.
    y = jax.lax.dot_general(
        w4r_ref[...], h,
        dimension_numbers=(((1,), (1,)), ((), ())),
        preferred_element_type=jnp.float32,
    )
    y = y + b4_ref[...]
    o_ref[...] = y.astype(o_ref.dtype)


def _round_up(x, m):
    return ((x + m - 1) // m) * m


@functools.partial(jax.jit, static_argnames=("batch_tile",))
def mlp_forward(x, params, *, batch_tile=2048):
    (w1, b1), (w2, b2), (w3, b3), (w4, b4) = params
    B, in_dim = x.shape

    assert batch_tile % 128 == 0, "batch_tile must be a multiple of 128"
    # Don't over-pad small batches, but keep the tile a multiple of 128 so the
    # lane-dense output block stays unmasked.
    bt = min(batch_tile, _round_up(B, 128))
    B_pad = _round_up(B, bt)
    if B_pad != B:
        x = jnp.pad(x, ((0, B_pad - B), (0, 0)))

    hid = w1.shape[1]
    out = w2.shape[1]
    half = w3.shape[1]

    # Pre-cast biases to f32 (they're added straight into f32 accumulators)
    # and lay fc4's weight out as a row for the lane-dense transposed dot.
    b1f = b1.astype(jnp.float32)
    b2f = b2.astype(jnp.float32)
    b3f = b3.astype(jnp.float32)
    b4f = b4.astype(jnp.float32)
    w4r = jnp.transpose(w4)  # (1, half)

    num_tiles = B_pad // bt
    grid = (num_tiles,)

    def xmap(i):
        return (i, 0)

    def wmap(i):
        # Constant block index: weights/biases stay resident in VMEM across the
        # whole grid (Pallas skips re-DMA when the block index is unchanged).
        return (0, 0)

    y = pl.pallas_call(
        mlp_kernel,
        out_shape=jax.ShapeDtypeStruct((num_tiles, bt), x.dtype),
        grid_spec=pltpu.PrefetchScalarGridSpec(
            num_scalar_prefetch=0,
            grid=grid,
            in_specs=[
                pl.BlockSpec((bt, in_dim), xmap),   # x tile (streams from HBM)
                pl.BlockSpec((in_dim, hid), wmap),  # w1
                pl.BlockSpec((1, hid), wmap),       # b1 (f32)
                pl.BlockSpec((hid, out), wmap),     # w2
                pl.BlockSpec((1, out), wmap),       # b2 (f32)
                pl.BlockSpec((out, half), wmap),    # w3
                pl.BlockSpec((1, half), wmap),      # b3 (f32)
                pl.BlockSpec((1, half), wmap),      # w4 (row layout)
                pl.BlockSpec((1, 1), wmap),         # b4 (f32)
            ],
            out_specs=pl.BlockSpec((1, bt), xmap),  # lane-dense: batch on lanes
        ),
        compiler_params=pltpu.CompilerParams(
            dimension_semantics=("parallel",)),
    )(x, w1, b1f, w2, b2f, w3, b3f, w4r, b4f)

    # (num_tiles, bt) -> (B, 1), dropping any batch padding.
    return y.reshape(-1)[:B].reshape(B, 1)


def init_linear(key, fan_in, fan_out, dtype=jnp.float32):
    # Mimic PyTorch nn.Linear default init: U(-1/sqrt(fan_in), 1/sqrt(fan_in)).
    kw, kb = jax.random.split(key)
    bound = 1.0 / (fan_in ** 0.5)
    # Stored as (in, out) = transpose of PyTorch's (out, in) layout.
    w = jax.random.uniform(kw, (fan_in, fan_out), dtype, -bound, bound)
    b = jax.random.uniform(kb, (1, fan_out), dtype, -bound, bound)
    return w, b


def mlp_reference(x, params):
    (w1, b1), (w2, b2), (w3, b3), (w4, b4) = params
    dt = x.dtype
    h = jnp.maximum(jnp.dot(x, w1, preferred_element_type=jnp.float32) + b1, 0.0).astype(dt)
    h = jnp.maximum(jnp.dot(h, w2, preferred_element_type=jnp.float32) + b2, 0.0).astype(dt)
    h = jnp.maximum(jnp.dot(h, w3, preferred_element_type=jnp.float32) + b3, 0.0).astype(dt)
    return jnp.dot(h, w4, preferred_element_type=jnp.float32) + b4


if __name__ == "__main__":
    # MLP(input_dim=32, hidden_dim=64, out_dim=32) -> fc3: 32->16, fc4: 16->1
    input_dim, hidden_dim, out_dim = 32, 64, 32
    half_dim = out_dim // 2
    batch = 256  # small demo batch; wrapper shrinks the tile to 256 rows

    key = jax.random.PRNGKey(0)
    k_x, k1, k2, k3, k4 = jax.random.split(key, 5)

    x = jax.random.normal(k_x, (batch, input_dim), jnp.float32)
    params = (
        init_linear(k1, input_dim, hidden_dim),
        init_linear(k2, hidden_dim, out_dim),
        init_linear(k3, out_dim, half_dim),
        init_linear(k4, half_dim, 1),
    )

    # f32 path (matches the PyTorch module's default dtype).
    y = mlp_forward(x, params)
    y = jax.block_until_ready(y)
    y_ref = mlp_reference(x, params)
    assert y.shape == (batch, 1), y.shape
    assert jnp.allclose(y, y_ref, atol=1e-4, rtol=1e-4), "f32 mismatch vs JAX reference"

    # bf16 path: native bf16 operands into the MXU with f32 accumulation
    # (halves the HBM traffic of the batch-scaling x stream). Loose tolerance
    # vs the f32 reference.
    x_bf16 = x.astype(jnp.bfloat16)
    params_bf16 = jax.tree_util.tree_map(lambda p: p.astype(jnp.bfloat16), params)
    y_bf16 = mlp_forward(x_bf16, params_bf16)
    y_bf16 = jax.block_until_ready(y_bf16)
    assert y_bf16.shape == (batch, 1), y_bf16.shape
    assert jnp.allclose(y_bf16.astype(jnp.float32), y_ref, atol=5e-2, rtol=5e-2), \
        "bf16 mismatch vs JAX reference"

    print("KERNEL_OK")
</pallas_src>

<mosaic_0001>
module attributes {stable_mosaic.version = 11 : i64} {
  func.func @mlp_kernel(%arg0: i32, %arg1: memref<256x32xf32, #tpu.memory_space<vmem>>, %arg2: memref<32x64xf32, #tpu.memory_space<vmem>>, %arg3: memref<1x64xf32, #tpu.memory_space<vmem>>, %arg4: memref<64x32xf32, #tpu.memory_space<vmem>>, %arg5: memref<1x32xf32, #tpu.memory_space<vmem>>, %arg6: memref<32x16xf32, #tpu.memory_space<vmem>>, %arg7: memref<1x16xf32, #tpu.memory_space<vmem>>, %arg8: memref<1x16xf32, #tpu.memory_space<vmem>>, %arg9: memref<1x1xf32, #tpu.memory_space<vmem>>, %arg10: memref<1x256xf32, #tpu.memory_space<vmem>>) attributes {dimension_semantics = [#tpu.dimension_semantics<parallel>], iteration_bounds = array<i64: 1>, scalar_prefetch = 0 : i64, scratch_operands = 0 : i64, tpu.core_type = #tpu.core_type<tc>, window_params = [{transform_indices = @transform_0, window_bounds = array<i64: 256, 32>}, {pipeline_mode = #tpu.pipeline_mode<synchronous>, transform_indices = @transform_1, window_bounds = array<i64: 32, 64>}, {pipeline_mode = #tpu.pipeline_mode<synchronous>, transform_indices = @transform_2, window_bounds = array<i64: 1, 64>}, {pipeline_mode = #tpu.pipeline_mode<synchronous>, transform_indices = @transform_3, window_bounds = array<i64: 64, 32>}, {pipeline_mode = #tpu.pipeline_mode<synchronous>, transform_indices = @transform_4, window_bounds = array<i64: 1, 32>}, {pipeline_mode = #tpu.pipeline_mode<synchronous>, transform_indices = @transform_5, window_bounds = array<i64: 32, 16>}, {pipeline_mode = #tpu.pipeline_mode<synchronous>, transform_indices = @transform_6, window_bounds = array<i64: 1, 16>}, {pipeline_mode = #tpu.pipeline_mode<synchronous>, transform_indices = @transform_7, window_bounds = array<i64: 1, 16>}, {pipeline_mode = #tpu.pipeline_mode<synchronous>, transform_indices = @transform_8, window_bounds = array<i64: 1, 1>}, {transform_indices = @transform_9, window_bounds = array<i64: 1, 256>}]} {
    %c0 = arith.constant 0 : index
    %c0_0 = arith.constant 0 : index
    %0 = vector.load %arg1[%c0, %c0_0] : memref<256x32xf32, #tpu.memory_space<vmem>>, vector<256x32xf32>
    %c0_1 = arith.constant 0 : index
    %c0_2 = arith.constant 0 : index
    %1 = vector.load %arg2[%c0_1, %c0_2] : memref<32x64xf32, #tpu.memory_space<vmem>>, vector<32x64xf32>
    %cst = arith.constant dense<0.000000e+00> : vector<256x64xf32>
    %2 = tpu.matmul %0, %1, %cst {dimension_numbers = #tpu.dot_dimension_numbers<[1], [0], [0], [1], [0, 0, 1, 1], [], []>} : vector<256x32xf32>, vector<32x64xf32>, vector<256x64xf32> -> vector<256x64xf32>
    %c0_3 = arith.constant 0 : index
    %c0_4 = arith.constant 0 : index
    %3 = vector.load %arg3[%c0_3, %c0_4] : memref<1x64xf32, #tpu.memory_space<vmem>>, vector<1x64xf32>
    %4 = vector.broadcast %3 : vector<1x64xf32> to vector<256x64xf32>
    %5 = arith.addf %2, %4 : vector<256x64xf32>
    %cst_5 = arith.constant 0.000000e+00 : f32
    %6 = vector.broadcast %cst_5 : f32 to vector<256x64xf32>
    %7 = arith.maximumf %5, %6 : vector<256x64xf32>
    %c0_6 = arith.constant 0 : index
    %c0_7 = arith.constant 0 : index
    %8 = vector.load %arg4[%c0_6, %c0_7] : memref<64x32xf32, #tpu.memory_space<vmem>>, vector<64x32xf32>
    %cst_8 = arith.constant dense<0.000000e+00> : vector<256x32xf32>
    %9 = tpu.matmul %7, %8, %cst_8 {dimension_numbers = #tpu.dot_dimension_numbers<[1], [0], [0], [1], [0, 0, 1, 1], [], []>} : vector<256x64xf32>, vector<64x32xf32>, vector<256x32xf32> -> vector<256x32xf32>
    %c0_9 = arith.constant 0 : index
    %c0_10 = arith.constant 0 : index
    %10 = vector.load %arg5[%c0_9, %c0_10] : memref<1x32xf32, #tpu.memory_space<vmem>>, vector<1x32xf32>
    %11 = vector.broadcast %10 : vector<1x32xf32> to vector<256x32xf32>
    %12 = arith.addf %9, %11 : vector<256x32xf32>
    %cst_11 = arith.constant 0.000000e+00 : f32
    %13 = vector.broadcast %cst_11 : f32 to vector<256x32xf32>
    %14 = arith.maximumf %12, %13 : vector<256x32xf32>
    %c0_12 = arith.constant 0 : index
    %c0_13 = arith.constant 0 : index
    %15 = vector.load %arg6[%c0_12, %c0_13] : memref<32x16xf32, #tpu.memory_space<vmem>>, vector<32x16xf32>
    %cst_14 = arith.constant dense<0.000000e+00> : vector<256x16xf32>
    %16 = tpu.matmul %14, %15, %cst_14 {dimension_numbers = #tpu.dot_dimension_numbers<[1], [0], [0], [1], [0, 0, 1, 1], [], []>} : vector<256x32xf32>, vector<32x16xf32>, vector<256x16xf32> -> vector<256x16xf32>
    %c0_15 = arith.constant 0 : index
    %c0_16 = arith.constant 0 : index
    %17 = vector.load %arg7[%c0_15, %c0_16] : memref<1x16xf32, #tpu.memory_space<vmem>>, vector<1x16xf32>
    %18 = vector.broadcast %17 : vector<1x16xf32> to vector<256x16xf32>
    %19 = arith.addf %16, %18 : vector<256x16xf32>
    %cst_17 = arith.constant 0.000000e+00 : f32
    %20 = vector.broadcast %cst_17 : f32 to vector<256x16xf32>
    %21 = arith.maximumf %19, %20 : vector<256x16xf32>
    %c0_18 = arith.constant 0 : index
    %c0_19 = arith.constant 0 : index
    %22 = vector.load %arg8[%c0_18, %c0_19] : memref<1x16xf32, #tpu.memory_space<vmem>>, vector<1x16xf32>
    %cst_20 = arith.constant dense<0.000000e+00> : vector<1x256xf32>
    %23 = tpu.matmul %22, %21, %cst_20 {dimension_numbers = #tpu.dot_dimension_numbers<[1], [1], [0], [0], [0, 0, 1, 0], [], []>} : vector<1x16xf32>, vector<256x16xf32>, vector<1x256xf32> -> vector<1x256xf32>
    %c0_21 = arith.constant 0 : index
    %c0_22 = arith.constant 0 : index
    %24 = vector.load %arg9[%c0_21, %c0_22] : memref<1x1xf32, #tpu.memory_space<vmem>>, vector<1x1xf32>
    %25 = vector.broadcast %24 : vector<1x1xf32> to vector<1x256xf32>
    %26 = arith.addf %23, %25 : vector<1x256xf32>
    %c0_23 = arith.constant 0 : index
    %c0_24 = arith.constant 0 : index
    %27 = vector.load %arg10[%c0_23, %c0_24] : memref<1x256xf32, #tpu.memory_space<vmem>>, vector<1x256xf32>
    tpu.vector_store %arg10[%c0_23, %c0_24], %26 {strides = array<i32>} : memref<1x256xf32, #tpu.memory_space<vmem>>, vector<1x256xf32>,
    return
  }
  func.func @transform_0(%arg0: i32) -> (i32, i32) {
    %c0_i32 = arith.constant 0 : i32
    %c0_i32_0 = arith.constant 0 : i32
    return %arg0, %c0_i32 : i32, i32
  }
  func.func @transform_1(%arg0: i32) -> (i32, i32) {
    %c0_i32 = arith.constant 0 : i32
    %c0_i32_0 = arith.constant 0 : i32
    %c0_i32_1 = arith.constant 0 : i32
    return %c0_i32, %c0_i32_0 : i32, i32
  }
  func.func @transform_2(%arg0: i32) -> (i32, i32) {
    %c0_i32 = arith.constant 0 : i32
    %c0_i32_0 = arith.constant 0 : i32
    %c0_i32_1 = arith.constant 0 : i32
    return %c0_i32, %c0_i32_0 : i32, i32
  }
  func.func @transform_3(%arg0: i32) -> (i32, i32) {
    %c0_i32 = arith.constant 0 : i32
    %c0_i32_0 = arith.constant 0 : i32
    %c0_i32_1 = arith.constant 0 : i32
    return %c0_i32, %c0_i32_0 : i32, i32
  }
  func.func @transform_4(%arg0: i32) -> (i32, i32) {
    %c0_i32 = arith.constant 0 : i32
    %c0_i32_0 = arith.constant 0 : i32
    %c0_i32_1 = arith.constant 0 : i32
    return %c0_i32, %c0_i32_0 : i32, i32
  }
  func.func @transform_5(%arg0: i32) -> (i32, i32) {
    %c0_i32 = arith.constant 0 : i32
    %c0_i32_0 = arith.constant 0 : i32
    %c0_i32_1 = arith.constant 0 : i32
    return %c0_i32, %c0_i32_0 : i32, i32
  }
  func.func @transform_6(%arg0: i32) -> (i32, i32) {
    %c0_i32 = arith.constant 0 : i32
    %c0_i32_0 = arith.constant 0 : i32
    %c0_i32_1 = arith.constant 0 : i32
    return %c0_i32, %c0_i32_0 : i32, i32
  }
  func.func @transform_7(%arg0: i32) -> (i32, i32) {
    %c0_i32 = arith.constant 0 : i32
    %c0_i32_0 = arith.constant 0 : i32
    %c0_i32_1 = arith.constant 0 : i32
    return %c0_i32, %c0_i32_0 : i32, i32
  }
  func.func @transform_8(%arg0: i32) -> (i32, i32) {
    %c0_i32 = arith.constant 0 : i32
    %c0_i32_0 = arith.constant 0 : i32
    %c0_i32_1 = arith.constant 0 : i32
    return %c0_i32, %c0_i32_0 : i32, i32
  }
  func.func @transform_9(%arg0: i32) -> (i32, i32) {
    %c0_i32 = arith.constant 0 : i32
    %c0_i32_0 = arith.constant 0 : i32
    return %arg0, %c0_i32 : i32, i32
  }
}

</mosaic_0001>

<bundles_post_ra>
// kernel: mlp_forward.1
= control target key start
LH: loop header
LB: loop body
LE: loop exit
PB: predicated region body
PF: predicated region fallthrough
CT: control target
= control target key end

     0   :  { %s2374_s0 = inlined_call_operand.vmem [shape: f32[256,32], index: 0, kind: input, shape index: {}]   ;;  %s2375_s1 = inlined_call_operand.vmem [shape: f32[32,64], index: 1, kind: input, shape index: {}]   ;;  %s2376_s2 = inlined_call_operand.vmem [shape: f32[1,64], index: 2, kind: input, shape index: {}]   ;;  %s2377_s3 = inlined_call_operand.vmem [shape: f32[64,32], index: 3, kind: input, shape index: {}]   ;;  %s2378_s4 = inlined_call_operand.vmem [shape: f32[1,32], index: 4, kind: input, shape index: {}]   ;;  %s2379_s5 = inlined_call_operand.vmem [shape: f32[32,16], index: 5, kind: input, shape index: {}]   ;;  %s2380_s6 = inlined_call_operand.vmem [shape: f32[1,16], index: 6, kind: input, shape index: {}]   ;;  %s2381_s7 = inlined_call_operand.vmem [shape: f32[1,16], index: 7, kind: input, shape index: {}]   ;;  %s2382_s8 = inlined_call_operand.<no memory space> [shape: f32[1,1], index: 8, kind: input, shape index: {}]   ;;  %s2383_s9 = inlined_call_operand.hbm [shape: f32[1,256], index: 9, kind: output, shape index: {}]  }
   0x1   :  { %v14_v0 = vstv %s2382_s8 }
   0x2   :  { %15 = vst [vmem:[#allocation2] sm:$0x1] %v14_v0 }
   0x3   :  { %v70_v1 = vld [vmem:[%s2375_s1 + $0x18] sm:$0xff]  ;;  %v69_v2 = vld [vmem:[%s2375_s1 + $0x10] sm:$0xff]  ;;  %vm78_vm0 = vcmask 261120   ;;  %v35_v3 = vld [vmem:[%s2374_s0] sm:$0xff] }
   0x4   :  { %1662 = vmatprep.subr.mxu0 %v70_v1  ;;  %1838 = vmatprep.subr.mxu1 %v70_v1  ;;  %v68_v4 = vld [vmem:[%s2375_s1 + $0x8] sm:$0xff]  ;;  %v67_v5 = vld [vmem:[%s2375_s1] sm:$0xff]  ;;  %v37_v7 = vld [vmem:[%s2374_s0 + $0x10] sm:$0xff] }
   0x5   :  { %1663 = vmatpush3.msra.mxu0 %v70_v1  ;;  %1670 = vmatprep.mubr.msk.f32.mxu0 %vm78_vm0, %v35_v3  ;;  %v36_v6 = vld [vmem:[%s2374_s0 + $0x8] sm:$0xff]  ;;  %v53_v8 = vld [vmem:[%s2374_s0 + $0x90] sm:$0xff]  ;;  %v54_v9 = vld [vmem:[%s2374_s0 + $0x98] sm:$0xff] }
   0x6   :  { %1664 = vmatprep.subr.mxu0 %v69_v2  ;;  %1842 = vmatpush3.msra.mxu1 %v70_v1  ;;  %v55_v10 = vld [vmem:[%s2374_s0 + $0xa0] sm:$0xff]  ;;  %v38_v11 = vld [vmem:[%s2374_s0 + $0x18] sm:$0xff]  ;;  %v56_v13 = vld [vmem:[%s2374_s0 + $0xa8] sm:$0xff] }
   0x7   :  { %1665 = vmatpush3.msra.mxu0 %v69_v2  ;;  %1839 = vmatprep.subr.mxu1 %v69_v2  ;;  %v39_v12 = vld [vmem:[%s2374_s0 + $0x20] sm:$0xff]  ;;  %v439_v14 = vld [vmem:[%s2377_s3 + $0x38] sm:$0xff]  ;;  %v438_v15 = vld [vmem:[%s2377_s3 + $0x30] sm:$0xff] }
   0x8   :  { %1666 = vmatprep.subr.mxu0 %v68_v4  ;;  %1843 = vmatpush3.msra.mxu1 %v69_v2  ;;  %v57_v16 = vld [vmem:[%s2374_s0 + $0xb0] sm:$0xff]  ;;  %v40_v17 = vld [vmem:[%s2374_s0 + $0x28] sm:$0xff] }
   0x9   :  { %1667 = vmatpush3.msra.mxu0 %v68_v4  ;;  %1840 = vmatprep.subr.mxu1 %v68_v4  ;;  %v437_v18 = vld [vmem:[%s2377_s3 + $0x28] sm:$0xff] }
   0xa   :  { %1668 = vmatprep.subr.mxu0 %v67_v5  ;;  %1844 = vmatpush3.msra.mxu1 %v68_v4 }
   0xb   :  { %1669 = vmatpush3.msra.mxu0 %v67_v5  ;;  %1841 = vmatprep.subr.mxu1 %v67_v5 }
   0xc   :  { %1671 = vmatmul.mubr.msk.f32.vlgmr.msra.gmra.mxu0 %vm78_vm0, %v36_v6  ;;  %1845 = vmatpush3.msra.mxu1 %v67_v5 }
   0xd   :  { %1673 = vmatprep.mubr.msk.f32.mxu0 %vm78_vm0, %v37_v7  ;;  %1697 = vmatprep.mubr.msk.f32.mxu1 %vm78_vm0, %v53_v8 }
   0xe   :  { %1698 = vmatmul.mubr.msk.f32.vlgmr.msra.gmra.mxu1 %vm78_vm0, %v54_v9  ;;  %1718 = vmatprep.subr.mxu1 %v439_v14 }
   0xf   :  { %1700 = vmatprep.mubr.msk.f32.mxu1 %vm78_vm0, %v55_v10  ;;  %1719 = vmatpush3.msra.mxu1 %v439_v14 }
  0x10   :  { %1674 = vmatmul.mubr.msk.f32.gmra.mxu0 %vm78_vm0, %v38_v11 }
  0x11   :  { %1676 = vmatprep.mubr.msk.f32.mxu0 %vm78_vm0, %v39_v12 }
  0x12   :  { %16 = vsyncpa [#allocation4], 0  ;;  %v41_v19 = vld [vmem:[%s2374_s0 + $0x30] sm:$0xff]  ;;  %1701 = vmatmul.mubr.msk.f32.gmra.mxu1 %vm78_vm0, %v56_v13  ;;  %1720 = vmatprep.subr.mxu1 %v438_v15  ;;  %v58_v20 = vld [vmem:[%s2374_s0 + $0xb8] sm:$0xff]  ;;  %vm447_vm1 = vcmask 523264   ;;  %vm1176_vm2 = vcmask 130048  }
  0x13   :  { %1703 = vmatprep.mubr.msk.f32.mxu1 %vm78_vm0, %v57_v16  ;;  %1721 = vmatpush3.msra.mxu1 %v438_v15  ;;  %v436_v21 = vld [vmem:[%s2377_s3 + $0x20] sm:$0xff]  ;;  %v42_v23 = vld [vmem:[%s2374_s0 + $0x38] sm:$0xff]  ;;  %v60_v26 = vld [vmem:[%s2374_s0 + $0xc8] sm:$0xff] }
  0x14   :  { %1677 = vmatmul.mubr.msk.f32.gmra.mxu0 %vm78_vm0, %v40_v17  ;;  %v59_v22 = vld [vmem:[%s2374_s0 + $0xc0] sm:$0xff]  ;;  %1722 = vmatprep.subr.mxu1 %v437_v18  ;;  %v435_v24 = vld [vmem:[%s2377_s3 + $0x18] sm:$0xff]  ;;  %v434_v27 = vld [vmem:[%s2377_s3 + $0x10] sm:$0xff] }
  0x15   :  { %1679 = vmatprep.mubr.msk.f32.mxu0 %vm78_vm0, %v41_v19  ;;  %1723 = vmatpush3.msra.mxu1 %v437_v18  ;;  %v43_v25 = vld [vmem:[%s2374_s0 + $0x40] sm:$0xff]  ;;  %v61_v28 = vld [vmem:[%s2374_s0 + $0xd0] sm:$0xff]  ;;  %v44_v29 = vld [vmem:[%s2374_s0 + $0x48] sm:$0xff] }
  0x16   :  { %1704 = vmatmul.mubr.msk.f32.gmra.mxu1 %vm78_vm0, %v58_v20  ;;  %1724 = vmatprep.subr.mxu1 %v436_v21  ;;  %v45_v30 = vld [vmem:[%s2374_s0 + $0x50] sm:$0xff]  ;;  %v62_v31 = vld [vmem:[%s2374_s0 + $0xd8] sm:$0xff]  ;;  %v63_v32 = vld [vmem:[%s2374_s0 + $0xe0] sm:$0xff] }
  0x17   :  { %1706 = vmatprep.mubr.msk.f32.mxu1 %vm78_vm0, %v59_v22  ;;  %1725 = vmatpush3.msra.mxu1 %v436_v21  ;;  %v46_v33 = vld [vmem:[%s2374_s0 + $0x58] sm:$0xff]  ;;  %v47_v34 = vld [vmem:[%s2374_s0 + $0x60] sm:$0xff]  ;;  %v64_v35 = vld [vmem:[%s2374_s0 + $0xe8] sm:$0xff] }
  0x18   :  { %1680 = vmatmul.mubr.msk.f32.gmra.mxu0 %vm78_vm0, %v42_v23  ;;  %1726 = vmatprep.subr.mxu1 %v435_v24  ;;  %v65_v36 = vld [vmem:[%s2374_s0 + $0xf0] sm:$0xff]  ;;  %v48_v37 = vld [vmem:[%s2374_s0 + $0x68] sm:$0xff]  ;;  %v66_v39 = vld [vmem:[%s2374_s0 + $0xf8] sm:$0xff] }
  0x19   :  { %1682 = vmatprep.mubr.msk.f32.mxu0 %vm78_vm0, %v43_v25  ;;  %1727 = vmatpush3.msra.mxu1 %v435_v24  ;;  %v49_v38 = vld [vmem:[%s2374_s0 + $0x70] sm:$0xff]  ;;  %v50_v40 = vld [vmem:[%s2374_s0 + $0x78] sm:$0xff]  ;;  %v51_v41 = vld [vmem:[%s2374_s0 + $0x80] sm:$0xff] }
  0x1a   :  { %1707 = vmatmul.mubr.msk.f32.gmra.mxu1 %vm78_vm0, %v60_v26  ;;  %1728 = vmatprep.subr.mxu1 %v434_v27  ;;  %v52_v42 = vld [vmem:[%s2374_s0 + $0x88] sm:$0xff]  ;;  %v432_v44 = vld [vmem:[%s2377_s3] sm:$0xff]  ;;  %v804_v45 = vld [vmem:[%s2379_s5 + $0x18] sm:$0xff] }
  0x1b   :  { %1709 = vmatprep.mubr.msk.f32.mxu1 %vm78_vm0, %v61_v28  ;;  %1729 = vmatpush3.msra.mxu1 %v434_v27  ;;  %v433_v43 = vld [vmem:[%s2377_s3 + $0x8] sm:$0xff]  ;;  %v803_v46 = vld [vmem:[%s2379_s5 + $0x10] sm:$0xff]  ;;  %v801_v48 = vld [vmem:[%s2379_s5] sm:$0xff] }
  0x1c   :  { %1683 = vmatmul.mubr.msk.f32.gmra.mxu0 %vm78_vm0, %v44_v29  ;;  %1730 = vmatprep.subr.mxu1 %v433_v43  ;;  %v802_v47 = vld [vmem:[%s2379_s5 + $0x8] sm:$0xff]  ;;  %v2107_v49 = vld [vmem:[%s2376_s2] ss:$0 sm:$0xff] }
  0x1d   :  { %1685 = vmatprep.mubr.msk.f32.mxu0 %vm78_vm0, %v45_v30  ;;  %1731 = vmatpush3.msra.mxu1 %v433_v43 }
  0x1e   :  { %1710 = vmatmul.mubr.msk.f32.gmra.mxu1 %vm78_vm0, %v62_v31  ;;  %1732 = vmatprep.subr.mxu1 %v432_v44 }
  0x1f   :  { %1712 = vmatprep.mubr.msk.f32.mxu1 %vm78_vm0, %v63_v32  ;;  %1733 = vmatpush3.msra.mxu1 %v432_v44 }
  0x20   :  { %1686 = vmatmul.mubr.msk.f32.gmra.mxu0 %vm78_vm0, %v46_v33  ;;  %1782 = vmatprep.subr.mxu0 %v804_v45 }
  0x21   :  { %1688 = vmatprep.mubr.msk.f32.mxu0 %vm78_vm0, %v47_v34  ;;  %1783 = vmatpush3.msra.mxu0 %v804_v45 }
  0x22   :  { %1713 = vmatmul.mubr.msk.f32.gmra.mxu1 %vm78_vm0, %v64_v35  ;;  %1784 = vmatprep.subr.mxu0 %v803_v46 }
  0x23   :  { %1715 = vmatprep.mubr.msk.f32.mxu1 %vm78_vm0, %v65_v36  ;;  %1785 = vmatpush3.msra.mxu0 %v803_v46 }
  0x24   :  { %1689 = vmatmul.mubr.msk.f32.gmra.mxu0 %vm78_vm0, %v48_v37  ;;  %1786 = vmatprep.subr.mxu0 %v802_v47 }
  0x25   :  { %1691 = vmatprep.mubr.msk.f32.mxu0 %vm78_vm0, %v49_v38  ;;  %1787 = vmatpush3.msra.mxu0 %v802_v47 }
  0x26   :  { %1716 = vmatmul.mubr.msk.f32.gmra.mxu1 %vm78_vm0, %v66_v39  ;;  %1788 = vmatprep.subr.mxu0 %v801_v48 }
  0x27   :  { %1789 = vmatpush3.msra.mxu0 %v801_v48 }
  0x28   :  { %1692 = vmatmul.mubr.msk.f32.gmra.mxu0 %vm78_vm0, %v50_v40 }
  0x29   :  { %1694 = vmatprep.mubr.msk.f32.mxu0 %vm78_vm0, %v51_v41 }
  0x2c   :  { %1695 = vmatmul.mubr.msk.f32.gmra.mxu0 %vm78_vm0, %v52_v42 }
  0xcc   :  { %v1672_v50 = vpop.f32.mrf.mxu0 }
  0xcd   :  { %v247_v51 = vadd.f32 %v1672_v50, %v2107_v49 }
  0xce   :  { %v241_v52 = vpop.f32.mrf.mxu0  ;;  %v2110_v53 = vpop.f32.mrf.mxu1 }
  0xcf   :  { %v242_v54 = vadd.f32 %v2107_v49, %v241_v52  ;;  %v401_v57 = vmax.f32 %v247_v51, 0.0 }
  0xd0   :  { %v1675_v55 = vpop.f32.mrf.mxu0  ;;  %v331_v60 = vpop.f32.mrf.mxu1 }
  0xd1   :  { %v400_v56 = vmax.f32 %v242_v54, 0.0  ;;  %v257_v58 = vadd.f32 %v1675_v55, %v2107_v49  ;;  %v332_v42 = vadd.f32 %v2107_v49, %v331_v60  ;;  %v337_v54 = vadd.f32 %v2110_v53, %v2107_v49 }
  0xd2   :  { %v251_v59 = vpop.f32.mrf.mxu0  ;;  %v2118_v3 = vpop.f32.mrf.mxu1 }
  0xd3   :  { %v252_v61 = vadd.f32 %v2107_v49, %v251_v59  ;;  %1734 = vmatprep.mubr.msk.f32.mxu1 %vm447_vm1, %v400_v56  ;;  %v403_v0 = vmax.f32 %v257_v58, 0.0  ;;  %v418_v50 = vmax.f32 %v332_v42, 0.0  ;;  %v419_v58 = vmax.f32 %v337_v54, 0.0 }
  0xd4   :  { %v1678_v62 = vpop.f32.mrf.mxu0  ;;  %1735 = vmatmul.mubr.msk.f32.vlgmr.msra.gmra.mxu1 %vm447_vm1, %v401_v57  ;;  %v341_v10 = vpop.f32.mrf.mxu1  ;;  %v347_v59 = vadd.f32 %v2118_v3, %v2107_v49 }
  0xd5   :  { %v402_v63 = vmax.f32 %v252_v61, 0.0  ;;  %v267_v1 = vadd.f32 %v1678_v62, %v2107_v49  ;;  %v342_v51 = vadd.f32 %v2107_v49, %v341_v10 }
  0xd6   :  { %v261_v2 = vpop.f32.mrf.mxu0  ;;  %v1705_v17 = vpop.f32.mrf.mxu1  ;;  %v421_v62 = vmax.f32 %v347_v59, 0.0 }
  0xd7   :  { %v262_v4 = vadd.f32 %v2107_v49, %v261_v2  ;;  %1737 = vmatprep.mubr.msk.f32.mxu1 %vm447_vm1, %v402_v63  ;;  %v405_v7 = vmax.f32 %v267_v1, 0.0  ;;  %v420_v56 = vmax.f32 %v342_v51, 0.0  ;;  %v357_v63 = vadd.f32 %v1705_v17, %v2107_v49 }
  0xd8   :  { %v1681_v5 = vpop.f32.mrf.mxu0  ;;  %1738 = vmatmul.mubr.msk.f32.gmra.mxu1 %vm447_vm1, %v403_v0  ;;  %v351_v24 = vpop.f32.mrf.mxu1 }
  0xd9   :  { %v404_v6 = vmax.f32 %v262_v4, 0.0  ;;  %v277_v8 = vadd.f32 %v1681_v5, %v2107_v49  ;;  %v352_v57 = vadd.f32 %v2107_v49, %v351_v24  ;;  %v423_v3 = vmax.f32 %v357_v63, 0.0 }
  0xda   :  { %v271_v9 = vpop.f32.mrf.mxu0  ;;  %v1708_v31 = vpop.f32.mrf.mxu1 }
  0xdb   :  { %v272_v11 = vadd.f32 %v2107_v49, %v271_v9  ;;  %1740 = vmatprep.mubr.msk.f32.mxu1 %vm447_vm1, %v404_v6  ;;  %v407_v14 = vmax.f32 %v277_v8, 0.0  ;;  %v422_v61 = vmax.f32 %v352_v57, 0.0  ;;  %v367_v4 = vadd.f32 %v1708_v31, %v2107_v49 }
  0xdc   :  { %v1684_v12 = vpop.f32.mrf.mxu0  ;;  %1741 = vmatmul.mubr.msk.f32.gmra.mxu1 %vm447_vm1, %v405_v7  ;;  %v361_v38 = vpop.f32.mrf.mxu1 }
  0xdd   :  { %v406_v13 = vmax.f32 %v272_v11, 0.0  ;;  %v287_v15 = vadd.f32 %v1684_v12, %v2107_v49  ;;  %v362_v53 = vadd.f32 %v2107_v49, %v361_v38  ;;  %v425_v8 = vmax.f32 %v367_v4, 0.0 }
  0xde   :  { %v281_v16 = vpop.f32.mrf.mxu0  ;;  %v1711_v46 = vpop.f32.mrf.mxu1 }
  0xdf   :  { %v282_v18 = vadd.f32 %v2107_v49, %v281_v16  ;;  %1743 = vmatprep.mubr.msk.f32.mxu1 %vm447_vm1, %v406_v13  ;;  %v409_v21 = vmax.f32 %v287_v15, 0.0  ;;  %v424_v1 = vmax.f32 %v362_v53, 0.0  ;;  %v377_v9 = vadd.f32 %v1711_v46, %v2107_v49 }
  0xe0   :  { %v1687_v19 = vpop.f32.mrf.mxu0  ;;  %1744 = vmatmul.mubr.msk.f32.gmra.mxu1 %vm447_vm1, %v407_v14  ;;  %v371_v55 = vpop.f32.mrf.mxu1 }
  0xe1   :  { %v408_v20 = vmax.f32 %v282_v18, 0.0  ;;  %v297_v22 = vadd.f32 %v1687_v19, %v2107_v49  ;;  %v372_v2 = vadd.f32 %v2107_v49, %v371_v55  ;;  %v427_v13 = vmax.f32 %v377_v9, 0.0  ;;  %v2182_v19 = vld [vmem:[%s2378_s4] ss:$0 sm:$0xff] }
  0xe2   :  { %v291_v23 = vpop.f32.mrf.mxu0  ;;  %v1714_v60 = vpop.f32.mrf.mxu1 }
  0xe3   :  { %v292_v25 = vadd.f32 %v2107_v49, %v291_v23  ;;  %1746 = vmatprep.mubr.msk.f32.mxu1 %vm447_vm1, %v408_v20  ;;  %v411_v28 = vmax.f32 %v297_v22, 0.0  ;;  %v426_v6 = vmax.f32 %v372_v2, 0.0  ;;  %v387_v14 = vadd.f32 %v1714_v60, %v2107_v49 }
  0xe4   :  { %v1690_v26 = vpop.f32.mrf.mxu0  ;;  %1747 = vmatmul.mubr.msk.f32.gmra.mxu1 %vm447_vm1, %v409_v21  ;;  %v381_v0 = vpop.f32.mrf.mxu1 }
  0xe5   :  { %v410_v27 = vmax.f32 %v292_v25, 0.0  ;;  %v307_v29 = vadd.f32 %v1690_v26, %v2107_v49  ;;  %v382_v7 = vadd.f32 %v2107_v49, %v381_v0  ;;  %v429_v16 = vmax.f32 %v387_v14, 0.0 }
  0xe6   :  { %v301_v30 = vpop.f32.mrf.mxu0  ;;  %v1717_v5 = vpop.f32.mrf.mxu1 }
  0xe7   :  { %v302_v32 = vadd.f32 %v2107_v49, %v301_v30  ;;  %1749 = vmatprep.mubr.msk.f32.mxu1 %vm447_vm1, %v410_v27  ;;  %v413_v35 = vmax.f32 %v307_v29, 0.0  ;;  %v428_v11 = vmax.f32 %v382_v7, 0.0  ;;  %v397_v17 = vadd.f32 %v1717_v5, %v2107_v49 }
  0xe8   :  { %v1693_v33 = vpop.f32.mrf.mxu0  ;;  %1750 = vmatmul.mubr.msk.f32.gmra.mxu1 %vm447_vm1, %v411_v28  ;;  %v391_v10 = vpop.f32.mrf.mxu1 }
  0xe9   :  { %v412_v34 = vmax.f32 %v302_v32, 0.0  ;;  %v317_v36 = vadd.f32 %v1693_v33, %v2107_v49  ;;  %v392_v12 = vadd.f32 %v2107_v49, %v391_v10  ;;  %v431_v18 = vmax.f32 %v397_v17, 0.0 }
  0xea   :  { %v311_v37 = vpop.f32.mrf.mxu0 }
  0xeb   :  { %v312_v39 = vadd.f32 %v2107_v49, %v311_v37  ;;  %1752 = vmatprep.mubr.msk.f32.mxu1 %vm447_vm1, %v412_v34  ;;  %v415_v43 = vmax.f32 %v317_v36, 0.0  ;;  %v430_v15 = vmax.f32 %v392_v12, 0.0 }
  0xec   :  { %v1696_v40 = vpop.f32.mrf.mxu0  ;;  %1753 = vmatmul.mubr.msk.f32.gmra.mxu1 %vm447_vm1, %v413_v35 }
  0xed   :  { %v414_v41 = vmax.f32 %v312_v39, 0.0  ;;  %v327_v44 = vadd.f32 %v1696_v40, %v2107_v49 }
  0xee   :  { %v321_v45 = vpop.f32.mrf.mxu0 }
  0xef   :  { %v322_v47 = vadd.f32 %v2107_v49, %v321_v45  ;;  %1755 = vmatprep.mubr.msk.f32.mxu1 %vm447_vm1, %v414_v41  ;;  %v417_v52 = vmax.f32 %v327_v44, 0.0 }
  0xf0   :  { %1756 = vmatmul.mubr.msk.f32.gmra.mxu1 %vm447_vm1, %v415_v43 }
  0xf1   :  { %v416_v48 = vmax.f32 %v322_v47, 0.0 }
  0xf3   :  { %1758 = vmatprep.mubr.msk.f32.mxu1 %vm447_vm1, %v416_v48 }
  0xf4   :  { %1759 = vmatmul.mubr.msk.f32.gmra.mxu1 %vm447_vm1, %v417_v52 }
  0xf5   :  { %1761 = vmatprep.mubr.msk.f32.mxu1 %vm447_vm1, %v418_v50 }
  0xf8   :  { %1762 = vmatmul.mubr.msk.f32.gmra.mxu1 %vm447_vm1, %v419_v58 }
  0xf9   :  { %1764 = vmatprep.mubr.msk.f32.mxu1 %vm447_vm1, %v420_v56 }
  0xfc   :  { %1765 = vmatmul.mubr.msk.f32.gmra.mxu1 %vm447_vm1, %v421_v62 }
  0xfd   :  { %1767 = vmatprep.mubr.msk.f32.mxu1 %vm447_vm1, %v422_v61 }
 0x100   :  { %1768 = vmatmul.mubr.msk.f32.gmra.mxu1 %vm447_vm1, %v423_v3 }
 0x101   :  { %1770 = vmatprep.mubr.msk.f32.mxu1 %vm447_vm1, %v424_v1 }
 0x104   :  { %1771 = vmatmul.mubr.msk.f32.gmra.mxu1 %vm447_vm1, %v425_v8 }
 0x105   :  { %1773 = vmatprep.mubr.msk.f32.mxu1 %vm447_vm1, %v426_v6 }
 0x108   :  { %1774 = vmatmul.mubr.msk.f32.gmra.mxu1 %vm447_vm1, %v427_v13 }
 0x109   :  { %1776 = vmatprep.mubr.msk.f32.mxu1 %vm447_vm1, %v428_v11 }
 0x10c   :  { %1777 = vmatmul.mubr.msk.f32.gmra.mxu1 %vm447_vm1, %v429_v16 }
 0x10d   :  { %1779 = vmatprep.mubr.msk.f32.mxu1 %vm447_vm1, %v430_v15 }
 0x110   :  { %1780 = vmatmul.mubr.msk.f32.gmra.mxu1 %vm447_vm1, %v431_v18 }
 0x194   :  { %v1736_v20 = vpop.f32.mrf.mxu1 }
 0x195   :  { %v616_v21 = vadd.f32 %v1736_v20, %v2182_v19 }
 0x196   :  { %v610_v22 = vpop.f32.mrf.mxu1 }
 0x197   :  { %v611_v23 = vadd.f32 %v2182_v19, %v610_v22  ;;  %v770_v25 = vmax.f32 %v616_v21, 0.0 }
 0x198   :  { %v1739_v24 = vpop.f32.mrf.mxu1 }
 0x199   :  { %v769_v49 = vmax.f32 %v611_v23, 0.0  ;;  %v626_v26 = vadd.f32 %v1739_v24, %v2182_v19 }
 0x19a   :  { %v620_v27 = vpop.f32.mrf.mxu1 }
 0x19b   :  { %v621_v28 = vadd.f32 %v2182_v19, %v620_v27  ;;  %1790 = vmatprep.mubr.msk.f32.mxu0 %vm78_vm0, %v769_v49  ;;  %v772_v31 = vmax.f32 %v626_v26, 0.0 }
 0x19c   :  { %v1742_v29 = vpop.f32.mrf.mxu1  ;;  %1791 = vmatmul.mubr.msk.f32.vlgmr.msra.gmra.mxu0 %vm78_vm0, %v770_v25 }
 0x19d   :  { %v771_v30 = vmax.f32 %v621_v28, 0.0  ;;  %v636_v32 = vadd.f32 %v1742_v29, %v2182_v19 }
 0x19e   :  { %v630_v33 = vpop.f32.mrf.mxu1 }
 0x19f   :  { %v631_v34 = vadd.f32 %v2182_v19, %v630_v33  ;;  %1793 = vmatprep.mubr.msk.f32.mxu0 %vm78_vm0, %v771_v30  ;;  %v774_v37 = vmax.f32 %v636_v32, 0.0 }
 0x1a0   :  { %v1745_v35 = vpop.f32.mrf.mxu1  ;;  %1794 = vmatmul.mubr.msk.f32.gmra.mxu0 %vm78_vm0, %v772_v31 }
 0x1a1   :  { %v773_v36 = vmax.f32 %v631_v34, 0.0  ;;  %v646_v38 = vadd.f32 %v1745_v35, %v2182_v19 }
 0x1a2   :  { %v640_v39 = vpop.f32.mrf.mxu1 }
 0x1a3   :  { %v641_v40 = vadd.f32 %v2182_v19, %v640_v39  ;;  %1796 = vmatprep.mubr.msk.f32.mxu0 %vm78_vm0, %v773_v36  ;;  %v776_v43 = vmax.f32 %v646_v38, 0.0 }
 0x1a4   :  { %v1748_v41 = vpop.f32.mrf.mxu1  ;;  %1797 = vmatmul.mubr.msk.f32.gmra.mxu0 %vm78_vm0, %v774_v37 }
 0x1a5   :  { %v775_v42 = vmax.f32 %v641_v40, 0.0  ;;  %v656_v44 = vadd.f32 %v1748_v41, %v2182_v19 }
 0x1a6   :  { %v650_v45 = vpop.f32.mrf.mxu1 }
 0x1a7   :  { %v651_v46 = vadd.f32 %v2182_v19, %v650_v45  ;;  %1799 = vmatprep.mubr.msk.f32.mxu0 %vm78_vm0, %v775_v42  ;;  %v778_v50 = vmax.f32 %v656_v44, 0.0 }
 0x1a8   :  { %v1751_v47 = vpop.f32.mrf.mxu1  ;;  %1800 = vmatmul.mubr.msk.f32.gmra.mxu0 %vm78_vm0, %v776_v43 }
 0x1a9   :  { %v777_v48 = vmax.f32 %v651_v46, 0.0  ;;  %v666_v51 = vadd.f32 %v1751_v47, %v2182_v19 }
 0x1aa   :  { %v660_v52 = vpop.f32.mrf.mxu1 }
 0x1ab   :  { %v661_v54 = vadd.f32 %v2182_v19, %v660_v52  ;;  %1802 = vmatprep.mubr.msk.f32.mxu0 %vm78_vm0, %v777_v48  ;;  %v780_v57 = vmax.f32 %v666_v51, 0.0 }
 0x1ac   :  { %v1754_v55 = vpop.f32.mrf.mxu1  ;;  %1803 = vmatmul.mubr.msk.f32.gmra.mxu0 %vm78_vm0, %v778_v50 }
 0x1ad   :  { %v779_v56 = vmax.f32 %v661_v54, 0.0  ;;  %v676_v58 = vadd.f32 %v1754_v55, %v2182_v19  ;;  %v2251_v54 = vld [vmem:[%s2381_s7] sm:$0x1] }
 0x1ae   :  { %v670_v59 = vpop.f32.mrf.mxu1  ;;  %1660 = vmatprep.mubr.msk.f32.mxu1 %vm1176_vm2, %v2251_v54  ;;  %v1166_v55 = vld [vmem:[#allocation2] sm:$0x1] }
 0x1af   :  { %v671_v60 = vadd.f32 %v2182_v19, %v670_v59  ;;  %1805 = vmatprep.mubr.msk.f32.mxu0 %vm78_vm0, %v779_v56  ;;  %v782_v62 = vmax.f32 %v676_v58, 0.0 }
 0x1b0   :  { %v1757_v61 = vpop.f32.mrf.mxu1  ;;  %1806 = vmatmul.mubr.msk.f32.gmra.mxu0 %vm78_vm0, %v780_v57  ;;  %v1872_v57 = vmov 0  }
 0x1b1   :  { %v781_v53 = vmax.f32 %v671_v60, 0.0  ;;  %v686_v63 = vadd.f32 %v1757_v61, %v2182_v19  ;;  %1849 = vset.pattern.permute.xlu0 %v1872_v57 }
 0x1b2   :  { %v680_v0 = vpop.f32.mrf.mxu1  ;;  %1169 = vperm.xlu0 %1849, %v1166_v55  }
 0x1b3   :  { %v681_v1 = vadd.f32 %v2182_v19, %v680_v0  ;;  %1808 = vmatprep.mubr.msk.f32.mxu0 %vm78_vm0, %v781_v53  ;;  %v784_v4 = vmax.f32 %v686_v63, 0.0 }
 0x1b4   :  { %v1760_v2 = vpop.f32.mrf.mxu1  ;;  %1809 = vmatmul.mubr.msk.f32.gmra.mxu0 %vm78_vm0, %v782_v62 }
 0x1b5   :  { %v783_v3 = vmax.f32 %v681_v1, 0.0  ;;  %v696_v5 = vadd.f32 %v1760_v2, %v2182_v19 }
 0x1b6   :  { %v690_v6 = vpop.f32.mrf.mxu1 }
 0x1b7   :  { %v691_v7 = vadd.f32 %v2182_v19, %v690_v6  ;;  %1811 = vmatprep.mubr.msk.f32.mxu0 %vm78_vm0, %v783_v3  ;;  %v786_v10 = vmax.f32 %v696_v5, 0.0 }
 0x1b8   :  { %v1763_v8 = vpop.f32.mrf.mxu1  ;;  %1812 = vmatmul.mubr.msk.f32.gmra.mxu0 %vm78_vm0, %v784_v4 }
 0x1b9   :  { %v785_v9 = vmax.f32 %v691_v7, 0.0  ;;  %v706_v11 = vadd.f32 %v1763_v8, %v2182_v19 }
 0x1ba   :  { %v700_v12 = vpop.f32.mrf.mxu1 }
 0x1bb   :  { %v701_v13 = vadd.f32 %v2182_v19, %v700_v12  ;;  %1814 = vmatprep.mubr.msk.f32.mxu0 %vm78_vm0, %v785_v9  ;;  %v788_v16 = vmax.f32 %v706_v11, 0.0 }
 0x1bc   :  { %v1766_v14 = vpop.f32.mrf.mxu1  ;;  %1815 = vmatmul.mubr.msk.f32.gmra.mxu0 %vm78_vm0, %v786_v10 }
 0x1bd   :  { %v787_v15 = vmax.f32 %v701_v13, 0.0  ;;  %v716_v17 = vadd.f32 %v1766_v14, %v2182_v19 }
 0x1be   :  { %v710_v18 = vpop.f32.mrf.mxu1 }
 0x1bf   :  { %v711_v20 = vadd.f32 %v2182_v19, %v710_v18  ;;  %1817 = vmatprep.mubr.msk.f32.mxu0 %vm78_vm0, %v787_v15  ;;  %v790_v23 = vmax.f32 %v716_v17, 0.0 }
 0x1c0   :  { %v1769_v21 = vpop.f32.mrf.mxu1  ;;  %1818 = vmatmul.mubr.msk.f32.gmra.mxu0 %vm78_vm0, %v788_v16 }
 0x1c1   :  { %v789_v22 = vmax.f32 %v711_v20, 0.0  ;;  %v726_v24 = vadd.f32 %v1769_v21, %v2182_v19 }
 0x1c2   :  { %v720_v49 = vpop.f32.mrf.mxu1 }
 0x1c3   :  { %v721_v25 = vadd.f32 %v2182_v19, %v720_v49  ;;  %1820 = vmatprep.mubr.msk.f32.mxu0 %vm78_vm0, %v789_v22  ;;  %v792_v28 = vmax.f32 %v726_v24, 0.0  ;;  %v2288_v22 = vld [vmem:[%s2380_s6] ss:$0 sm:$0xff]  ;;  %s1874_s6 = smov [#allocation3]  }
 0x1c4   :  { %v1772_v26 = vpop.f32.mrf.mxu1  ;;  %1821 = vmatmul.mubr.msk.f32.gmra.mxu0 %vm78_vm0, %v790_v23  ;;  %s1376_s17 = sshll.u32 %s1874_s6, 4  ;;  %s1377_s17 = int_to_ptr.vmem [resolvable:$true] %s1376_s17 }
 0x1c5   :  { %v791_v27 = vmax.f32 %v721_v25, 0.0  ;;  %v736_v29 = vadd.f32 %v1772_v26, %v2182_v19  ;;  %s1850_s18 = scalar_lea.vmem %s1377_s17, 32  ;;  %p1855_p1 = scmp.lt.s32.totalorder %s1377_s17, %s1377_s17 }
 0x1c6   :  { %v730_v30 = vpop.f32.mrf.mxu1  ;;  %p1851_p0 = scmp.ne.s32.totalorder %s1377_s17, %s1850_s18  ;;  %p1856_p2 = scmp.lt.s32.totalorder %s1850_s18, %s1850_s18 }
 0x1c7   :  { %v731_v31 = vadd.f32 %v2182_v19, %v730_v30  ;;  %1823 = vmatprep.mubr.msk.f32.mxu0 %vm78_vm0, %v791_v27  ;;  %v794_v34 = vmax.f32 %v736_v29, 0.0 }
 0x1c8   :  { %v1775_v32 = vpop.f32.mrf.mxu1  ;;  %1824 = vmatmul.mubr.msk.f32.gmra.mxu0 %vm78_vm0, %v792_v28  ;;  %p1857_p3 = por %p1856_p2, %p1855_p1 }
 0x1c9   :  { %v793_v33 = vmax.f32 %v731_v31, 0.0  ;;  %v746_v35 = vadd.f32 %v1775_v32, %v2182_v19 }
 0x1ca   :  { %v740_v36 = vpop.f32.mrf.mxu1  ;;  %p1858_p4 = pnand %p1857_p3, %p1851_p0 }
 0x1cb   :  { %v741_v37 = vadd.f32 %v2182_v19, %v740_v36  ;;  %1826 = vmatprep.mubr.msk.f32.mxu0 %vm78_vm0, %v793_v33  ;;  %v796_v40 = vmax.f32 %v746_v35, 0.0 }
 0x1cc   :  { %v1778_v38 = vpop.f32.mrf.mxu1  ;;  %1827 = vmatmul.mubr.msk.f32.gmra.mxu0 %vm78_vm0, %v794_v34 }
 0x1cd   :  { %v795_v39 = vmax.f32 %v741_v37, 0.0  ;;  %v756_v41 = vadd.f32 %v1778_v38, %v2182_v19 }
 0x1ce   :  { %v750_v42 = vpop.f32.mrf.mxu1 }
 0x1cf   :  { %v751_v43 = vadd.f32 %v2182_v19, %v750_v42  ;;  %1829 = vmatprep.mubr.msk.f32.mxu0 %vm78_vm0, %v795_v39  ;;  %v798_v46 = vmax.f32 %v756_v41, 0.0 }
 0x1d0   :  { %v1781_v44 = vpop.f32.mrf.mxu1  ;;  %1830 = vmatmul.mubr.msk.f32.gmra.mxu0 %vm78_vm0, %v796_v40 }
 0x1d1   :  { %v797_v45 = vmax.f32 %v751_v43, 0.0  ;;  %v766_v47 = vadd.f32 %v1781_v44, %v2182_v19 }
 0x1d2   :  { %v760_v48 = vpop.f32.mrf.mxu1 }
 0x1d3   :  { %v761_v50 = vadd.f32 %v2182_v19, %v760_v48  ;;  %1832 = vmatprep.mubr.msk.f32.mxu0 %vm78_vm0, %v797_v45  ;;  %v800_v52 = vmax.f32 %v766_v47, 0.0 }
 0x1d4   :  { %1833 = vmatmul.mubr.msk.f32.gmra.mxu0 %vm78_vm0, %v798_v46 }
 0x1d5   :  { %v799_v51 = vmax.f32 %v761_v50, 0.0 }
 0x1d7   :  { %1835 = vmatprep.mubr.msk.f32.mxu0 %vm78_vm0, %v799_v51 }
 0x1d8   :  { %1836 = vmatmul.mubr.msk.f32.gmra.mxu0 %vm78_vm0, %v800_v52 }
 0x25c   :  { %v2255_v19 = vpop.f32.mrf.mxu0 }
 0x25e   :  { %v2257_v56 = vpop.f32.mrf.mxu0 }
 0x260   :  { %v2259_v58 = vpop.f32.mrf.mxu0 }
 0x262   :  { %v2261_v59 = vpop.f32.mrf.mxu0 }
 0x264   :  { %v2263_v60 = vpop.f32.mrf.mxu0 }
 0x266   :  { %v2265_v61 = vpop.f32.mrf.mxu0 }
 0x268   :  { %v2267_v53 = vpop.f32.mrf.mxu0 }
 0x26a   :  { %v2269_v62 = vpop.f32.mrf.mxu0 }
 0x26c   :  { %v1804_v63 = vpop.f32.mrf.mxu0 }
 0x26d   :  { %v1020_v48 = vadd.f32 %v1804_v63, %v2288_v22  ;;  %v1010_v63 = vadd.f32 %v2267_v53, %v2288_v22  ;;  %v1000_v53 = vadd.f32 %v2263_v60, %v2288_v22  ;;  %v990_v60 = vadd.f32 %v2259_v58, %v2288_v22 }
 0x26e   :  { %v2271_v0 = vpop.f32.mrf.mxu0  ;;  %v980_v58 = vadd.f32 %v2255_v19, %v2288_v22  ;;  %v1172_v19 = vlaneseq }
 0x26f   :  { %v1142_v55 = vmax.f32 %v1020_v48, 0.0  ;;  %v1015_v57 = vadd.f32 %v2288_v22, %v2271_v0  ;;  %v1005_v0 = vadd.f32 %v2288_v22, %v2269_v62  ;;  %v1138_v62 = vmax.f32 %v1000_v53, 0.0 }
 0x270   :  { %v1807_v1 = vpop.f32.mrf.mxu0  ;;  %vm1367_vm3 = vcmp.lt.s32.totalorder %v1172_v19, 256 }
 0x271   :  { %v1030_v40 = vadd.f32 %v1807_v1, %v2288_v22 }
 0x272   :  { %v1024_v2 = vpop.f32.mrf.mxu0 }
 0x273   :  { %v1144_v44 = vmax.f32 %v1030_v40, 0.0  ;;  %v1025_v45 = vadd.f32 %v2288_v22, %v1024_v2 }
 0x274   :  { %v1810_v3 = vpop.f32.mrf.mxu0 }
 0x275   :  { %v1040_v32 = vadd.f32 %v1810_v3, %v2288_v22  ;;  %v1143_v50 = vmax.f32 %v1025_v45, 0.0  ;;  %v1141_v3 = vmax.f32 %v1015_v57, 0.0 }
 0x276   :  { %v1034_v4 = vpop.f32.mrf.mxu0 }
 0x277   :  { %v1146_v36 = vmax.f32 %v1040_v32, 0.0  ;;  %v1035_v37 = vadd.f32 %v2288_v22, %v1034_v4  ;;  %v1170_v32 = vpop.permute.xlu0 %1169 }
 0x278   :  { %v1813_v5 = vpop.f32.mrf.mxu0 }
 0x279   :  { %v1050_v23 = vadd.f32 %v1813_v5, %v2288_v22  ;;  %v1145_v41 = vmax.f32 %v1035_v37, 0.0 }
 0x27a   :  { %v1044_v6 = vpop.f32.mrf.mxu0 }
 0x27b   :  { %v1148_v28 = vmax.f32 %v1050_v23, 0.0  ;;  %v1045_v29 = vadd.f32 %v2288_v22, %v1044_v6  ;;  %v1140_v6 = vmax.f32 %v1010_v63, 0.0 }
 0x27c   :  { %v2273_v7 = vpop.f32.mrf.mxu0 }
 0x27d   :  { %v1147_v33 = vmax.f32 %v1045_v29, 0.0 }
 0x27e   :  { %v2275_v8 = vpop.f32.mrf.mxu0 }
 0x280   :  { %v2277_v9 = vpop.f32.mrf.mxu0 }
 0x282   :  { %v2279_v10 = vpop.f32.mrf.mxu0 }
 0x283   :  { %v1065_v23 = vadd.f32 %v2288_v22, %v2279_v10 }
 0x284   :  { %v2281_v11 = vpop.f32.mrf.mxu0 }
 0x286   :  { %v2283_v12 = vpop.f32.mrf.mxu0 }
 0x288   :  { %v1825_v13 = vpop.f32.mrf.mxu0 }
 0x289   :  { %v1090_v1 = vadd.f32 %v1825_v13, %v2288_v22  ;;  %v1080_v13 = vadd.f32 %v2281_v11, %v2288_v22  ;;  %v995_v11 = vadd.f32 %v2288_v22, %v2265_v61  ;;  %v1136_v61 = vmax.f32 %v990_v60, 0.0 }
 0x28a   :  { %v1084_v14 = vpop.f32.mrf.mxu0 }
 0x28b   :  { %v1156_v4 = vmax.f32 %v1090_v1, 0.0  ;;  %v1085_v5 = vadd.f32 %v2288_v22, %v1084_v14  ;;  %v1139_v14 = vmax.f32 %v1005_v0, 0.0 }
 0x28c   :  { %v1828_v15 = vpop.f32.mrf.mxu0 }
 0x28d   :  { %v1100_v46 = vadd.f32 %v1828_v15, %v2288_v22  ;;  %v1155_v15 = vmax.f32 %v1085_v5, 0.0 }
 0x28e   :  { %v1094_v16 = vpop.f32.mrf.mxu0 }
 0x28f   :  { %v1158_v51 = vmax.f32 %v1100_v46, 0.0  ;;  %v1095_v52 = vadd.f32 %v2288_v22, %v1094_v16  ;;  %v1154_v16 = vmax.f32 %v1080_v13, 0.0 }
 0x290   :  { %v1831_v17 = vpop.f32.mrf.mxu0 }
 0x291   :  { %v1110_v38 = vadd.f32 %v1831_v17, %v2288_v22  ;;  %v1157_v2 = vmax.f32 %v1095_v52, 0.0  ;;  %v1075_v17 = vadd.f32 %v2288_v22, %v2283_v12  ;;  %v1137_v12 = vmax.f32 %v995_v11, 0.0 }
 0x292   :  { %v1104_v18 = vpop.f32.mrf.mxu0 }
 0x293   :  { %v1160_v42 = vmax.f32 %v1110_v38, 0.0  ;;  %v1105_v43 = vadd.f32 %v2288_v22, %v1104_v18  ;;  %v1070_v18 = vadd.f32 %v2277_v9, %v2288_v22  ;;  %v985_v9 = vadd.f32 %v2288_v22, %v2261_v59 }
 0x294   :  { %v1834_v20 = vpop.f32.mrf.mxu0  ;;  %v1134_v59 = vmax.f32 %v980_v58, 0.0 }
 0x295   :  { %v1120_v30 = vadd.f32 %v1834_v20, %v2288_v22  ;;  %v1159_v47 = vmax.f32 %v1105_v43, 0.0  ;;  %v1153_v20 = vmax.f32 %v1075_v17, 0.0  ;;  %v1135_v10 = vmax.f32 %v985_v9, 0.0 }
 0x296   :  { %v1114_v21 = vpop.f32.mrf.mxu0 }
 0x297   :  { %v1162_v34 = vmax.f32 %v1120_v30, 0.0  ;;  %v1115_v35 = vadd.f32 %v2288_v22, %v1114_v21  ;;  %v1152_v21 = vmax.f32 %v1070_v18, 0.0  ;;  %v1873_v30 = vmov 1966171168  }
 0x298   :  { %v1837_v24 = vpop.f32.mrf.mxu0 }
 0x299   :  { %v1130_v49 = vadd.f32 %v1837_v24, %v2288_v22  ;;  %v1161_v39 = vmax.f32 %v1115_v35, 0.0  ;;  %v1060_v24 = vadd.f32 %v2273_v7, %v2288_v22  ;;  %v975_v7 = vadd.f32 %v2288_v22, %v2257_v56 }
 0x29a   :  { %v1124_v25 = vpop.f32.mrf.mxu0 }
 0x29b   :  { %v1164_v26 = vmax.f32 %v1130_v49, 0.0  ;;  %v1125_v27 = vadd.f32 %v2288_v22, %v1124_v25  ;;  %v1151_v49 = vmax.f32 %v1065_v23, 0.0  ;;  %v1150_v25 = vmax.f32 %v1060_v24, 0.0 }
 0x29d   :  { %v1163_v31 = vmax.f32 %v1125_v27, 0.0  ;;  %1628 = vmatprep.subr.msk.mxu1 %vm1176_vm2, %v1164_v26  ;;  %v1055_v26 = vadd.f32 %v2288_v22, %v2275_v8  ;;  %v1173_v8 = vshrl.u32 %v1172_v19, 7 }
 0x29e   :  { %1629 = vmatpush3.xpose.msk.msra.mxu1 %vm1176_vm2, %v1148_v28  ;;  %v1133_v28 = vmax.f32 %v975_v7, 0.0 }
 0x29f   :  { %1630 = vmatprep.subr.msk.mxu1 %vm1176_vm2, %v1163_v31  ;;  %v1149_v27 = vmax.f32 %v1055_v26, 0.0  ;;  %v1174_v29 = vsub.s32 0, %v1173_v8  ;;  %v1351_v31 = vunpack.c.l.s4 %v1873_v30 }
 0x2a2   :  { %1631 = vmatpush3.xpose.msk.msra.mxu1 %vm1176_vm2, %v1147_v33  ;;  %v1175_v33 = vrot.slane %v1170_v32, %v1174_v29 }
 0x2a3   :  { %1632 = vmatprep.subr.msk.mxu1 %vm1176_vm2, %v1162_v34  ;;  %v1352_v34 = vunpack.c.0.s8 %v1351_v31 }
 0x2a5   :  { %v1355_v37 = vsub.s32 %v1352_v34, %v1173_v8 }
 0x2a6   :  { %1633 = vmatpush3.xpose.msk.msra.mxu1 %vm1176_vm2, %v1146_v36 }
 0x2a7   :  { %1634 = vmatprep.subr.msk.mxu1 %vm1176_vm2, %v1161_v39 }
 0x2aa   :  { %1635 = vmatpush3.xpose.msk.msra.mxu1 %vm1176_vm2, %v1145_v41 }
 0x2ab   :  { %1636 = vmatprep.subr.msk.mxu1 %vm1176_vm2, %v1160_v42 }
 0x2ae   :  { %1637 = vmatpush3.xpose.msk.msra.mxu1 %vm1176_vm2, %v1144_v44 }
 0x2af   :  { %1638 = vmatprep.subr.msk.mxu1 %vm1176_vm2, %v1159_v47 }
 0x2b2   :  { %1639 = vmatpush3.xpose.msk.msra.mxu1 %vm1176_vm2, %v1143_v50 }
 0x2b3   :  { %1640 = vmatprep.subr.msk.mxu1 %vm1176_vm2, %v1158_v51 }
 0x2b6   :  { %1641 = vmatpush3.xpose.msk.msra.mxu1 %vm1176_vm2, %v1142_v55 }
 0x2b7   :  { %1642 = vmatprep.subr.msk.mxu1 %vm1176_vm2, %v1157_v2 }
 0x2ba   :  { %1643 = vmatpush3.xpose.msk.msra.mxu1 %vm1176_vm2, %v1141_v3 }
 0x2bb   :  { %1644 = vmatprep.subr.msk.mxu1 %vm1176_vm2, %v1156_v4 }
 0x2be   :  { %1645 = vmatpush3.xpose.msk.msra.mxu1 %vm1176_vm2, %v1140_v6 }
 0x2bf   :  { %1646 = vmatprep.subr.msk.mxu1 %vm1176_vm2, %v1155_v15 }
 0x2c2   :  { %1647 = vmatpush3.xpose.msk.msra.mxu1 %vm1176_vm2, %v1139_v14 }
 0x2c3   :  { %1648 = vmatprep.subr.msk.mxu1 %vm1176_vm2, %v1154_v16 }
 0x2c6   :  { %1649 = vmatpush3.xpose.msk.msra.mxu1 %vm1176_vm2, %v1138_v62 }
 0x2c7   :  { %1650 = vmatprep.subr.msk.mxu1 %vm1176_vm2, %v1153_v20 }
 0x2ca   :  { %1651 = vmatpush3.xpose.msk.msra.mxu1 %vm1176_vm2, %v1137_v12 }
 0x2cb   :  { %1652 = vmatprep.subr.msk.mxu1 %vm1176_vm2, %v1152_v21 }
 0x2ce   :  { %1653 = vmatpush3.xpose.msk.msra.mxu1 %vm1176_vm2, %v1136_v61 }
 0x2cf   :  { %1654 = vmatprep.subr.msk.mxu1 %vm1176_vm2, %v1151_v49 }
 0x2d2   :  { %1655 = vmatpush3.xpose.msk.msra.mxu1 %vm1176_vm2, %v1135_v10 }
 0x2d3   :  { %1656 = vmatprep.subr.msk.mxu1 %vm1176_vm2, %v1150_v25 }
 0x2d6   :  { %1657 = vmatpush3.xpose.msk.msra.mxu1 %vm1176_vm2, %v1134_v59 }
 0x2d7   :  { %1658 = vmatprep.subr.msk.mxu1 %vm1176_vm2, %v1149_v27 }
 0x2da   :  { %1659 = vmatpush3.xpose.msk.msra.mxu1 %vm1176_vm2, %v1133_v28 }
 0x2dd   :  { %1661 = vmatmul.mubr.msk.f32.vlgmr.msra.gmra.mxu1 %vm1176_vm2, %v2251_v54 }
 0x39d   :  { %v1342_v56 = vpop.f32.mrf.mxu1 }
 0x39e   :  { %v1343_v35 = vadd.f32 %v1342_v56, %v1175_v33 }
 0x39f   :  { %v1344_v22 = vpop.f32.mrf.mxu1 }
 0x3a0   :  { %v1345_v36 = vadd.f32 %v1344_v22, %v1175_v33 }
 0x3a2   :  { %v1349_v38 = vcombine.low %v1343_v35, %v1345_v36 }
 0x3a4   :  { %v1356_v39 = vrot.slane %v1349_v38, %v1355_v37 }
 0x3a6   :  { %v1363_v40 = vrot.slane %v1356_v39, %v1355_v37 }
 0x3a8   :  { %1369 = vst.msk [vmem:[#allocation3] sm:$0x3] %vm1367_vm3, %v1363_v40 }
 0x3a9   :  { %1861 = shalt.err (!%p1858_p4)
}
 0x3aa   :  { %1379 = dma.vmem_to_hbm [thread:$0]  %s1377_s17, 32, %s2383_s9, [#allocation4]  }
 0x3ab   :  { %1870 = dma.done.wait [#allocation4], 32  }
 0x3ac   :  { %1871 = vsyncadd [#allocation4], 4294967264 }
 0x3ad   :  { %1383 = vsyncpa [#allocation4], 1 }

</bundles_post_ra>
